<compile_context>
chip_gen: v6e
topology: v6e:2x2x1
jax: 0.10.0
libtpu: 0.0.40
codegen_flags: <defaults>
</compile_context>

<pallas_src>
import functools

import numpy as np
import jax
import jax.numpy as jnp
from jax.experimental import pallas as pl
from jax.experimental.pallas import tpu as pltpu


_PARAM_NAMES = ("wv_enc", "wv_dec", "wa_enc", "wa_dec")
_LOSS_LANES = 128          # lane-dense packed per-sample loss slab
_EMA_LANE = 512            # lane width of the persistent flat parameter storage


# --------------------------------------------------------------------------------------
# Small helpers
# --------------------------------------------------------------------------------------

def _pick_batch_tile(B):
    """Batch tile: prefer >=2 grid steps (v7x megacore) with sublane-aligned tiles."""
    if B < 16:
        return B
    cap = min(128, B // 2)
    tb = (cap // 8) * 8
    while tb >= 8:
        if B % tb == 0:
            return tb
        tb -= 8
    return B


def _block_diag2(a, b):
    ra, ca = a.shape
    rb, cb = b.shape
    top = jnp.concatenate([a, jnp.zeros((ra, cb), a.dtype)], axis=1)
    bot = jnp.concatenate([jnp.zeros((rb, ca), b.dtype), b], axis=1)
    return jnp.concatenate([top, bot], axis=0)


def _flatten_params(params):
    """Flatten + pad parameters into the persistent (rows, _EMA_LANE) f32 slab."""
    flat = jnp.concatenate([params[n].reshape(-1).astype(jnp.float32)
                            for n in _PARAM_NAMES])
    total = int(flat.shape[0])
    rows = -(-total // _EMA_LANE)
    pad = rows * _EMA_LANE - total
    if pad:
        flat = jnp.pad(flat, (0, pad))
    return flat.reshape(rows, _EMA_LANE)


def _derive_ema_mats(ema_flat, Dv, Da, H):
    """Slice the flat EMA slab back into the four weight matrices (f32)."""
    flat = ema_flat.reshape(-1)
    sizes = (Dv * H, H * Dv, Da * H, H * Da)
    offs = np.cumsum((0,) + sizes)
    wve = flat[offs[0]:offs[1]].reshape(Dv, H)
    wvd = flat[offs[1]:offs[2]].reshape(H, Dv)
    wae = flat[offs[2]:offs[3]].reshape(Da, H)
    wad = flat[offs[3]:offs[4]].reshape(H, Da)
    return wve, wvd, wae, wad


def _build_weight_blocks(enc_cur_bd, dec_cur_bd, ema_flat, Dv, Da, H, n_sets):
    """Block-diagonal fused weights for [current | ema] weight sets (bf16)."""
    if n_sets == 1:
        return enc_cur_bd, dec_cur_bd
    wve, wvd, wae, wad = _derive_ema_mats(ema_flat, Dv, Da, H)
    enc_ema_bd = _block_diag2(wve, wae).astype(jnp.bfloat16)
    dec_ema_bd = _block_diag2(wvd, wad).astype(jnp.bfloat16)
    enc_all = jnp.concatenate([enc_cur_bd, enc_ema_bd], axis=1)        # (Dv+Da, 4H)
    dec_all = _block_diag2(dec_cur_bd, dec_ema_bd)                     # (4H, 2(Dv+Da))
    return enc_all, dec_all


# --------------------------------------------------------------------------------------
# Fused backbone kernel: both modalities x n_sets weight sets in one pass
# --------------------------------------------------------------------------------------

def _fused_backbone_kernel(xv_ref, xa_ref, we_ref, wd_ref, pooled_ref, loss_ref, *,
                           n_sets):
    TB, T, Dv = xv_ref.shape
    Da = xa_ref.shape[2]
    Hn = we_ref.shape[1]             # n_sets * 2 * H
    DD = wd_ref.shape[1]             # n_sets * (Dv + Da)

    # bf16 activations go straight to the MXU (no f32<->bf16 round trip).
    xv2 = xv_ref[...].reshape(TB * T, Dv)
    xa2 = xa_ref[...].reshape(TB * T, Da)
    x2 = jnp.concatenate([xv2, xa2], axis=1)                       # (TB*T, Dv+Da) bf16

    # Encoder: one MXU matmul for all modalities/sets, f32 accumulation.
    latent = jnp.dot(x2, we_ref[...], preferred_element_type=jnp.float32)   # (TB*T, Hn)
    pooled_ref[...] = jnp.mean(latent.reshape(TB, T, Hn), axis=1)           # (TB, Hn)

    # Decoder (block-diagonal): one MXU matmul, K = Hn, N = DD.
    recon = jnp.dot(latent.astype(jnp.bfloat16), wd_ref[...],
                    preferred_element_type=jnp.float32)                     # (TB*T, DD)

    # Reconstruction error in f32 (cast x exactly once, here).
    x_rep = jnp.concatenate([x2] * n_sets, axis=1).astype(jnp.float32)      # (TB*T, DD)
    err = recon - x_rep
    e2 = jnp.mean((err * err).reshape(TB, T, DD), axis=1)                   # (TB, DD)

    # Per-sample, per-modality, per-set losses packed into a lane-dense (TB, 128) slab:
    # columns [2s, 2s+1] = (loss_v, loss_a) of weight set s.
    loss_ref[...] = jnp.zeros_like(loss_ref)
    for s in range(n_sets):
        off = s * (Dv + Da)
        loss_ref[:, 2 * s:2 * s + 1] = jnp.mean(
            e2[:, off:off + Dv], axis=1, keepdims=True)
        loss_ref[:, 2 * s + 1:2 * s + 2] = jnp.mean(
            e2[:, off + Dv:off + Dv + Da], axis=1, keepdims=True)


def _fused_backbone(video, audio, enc_all, dec_all, n_sets):
    """One pallas_call: pooled (Bc, n_sets*2H) f32, packed losses (Bc, 128) f32."""
    Bc, T, Dv = video.shape
    Da = audio.shape[2]
    Hn = enc_all.shape[1]
    DD = dec_all.shape[1]
    TB = _pick_batch_tile(Bc)
    nb = Bc // TB

    flops = 2 * Bc * T * (Dv + Da) * Hn + 2 * Bc * T * Hn * DD
    bytes_accessed = (Bc * T * (Dv + Da) * 2 + (Dv + Da) * Hn * 2 + Hn * DD * 2
                      + Bc * Hn * 4 + Bc * _LOSS_LANES * 4)

    kern = functools.partial(_fused_backbone_kernel, n_sets=n_sets)
    pooled, losses = pl.pallas_call(
        kern,
        grid=(nb,),
        in_specs=[
            pl.BlockSpec((TB, T, Dv), lambda i: (i, 0, 0)),
            pl.BlockSpec((TB, T, Da), lambda i: (i, 0, 0)),
            # weight blocks are tiny (<=32 KiB); double-buffering them is negligible,
            # so pipeline_mode=pl.Buffered(1) is intentionally not used here.
            pl.BlockSpec((Dv + Da, Hn), lambda i: (0, 0)),
            pl.BlockSpec((Hn, DD), lambda i: (0, 0)),
        ],
        out_specs=[
            pl.BlockSpec((TB, Hn), lambda i: (i, 0)),
            pl.BlockSpec((TB, _LOSS_LANES), lambda i: (i, 0)),
        ],
        out_shape=[
            jax.ShapeDtypeStruct((Bc, Hn), jnp.float32),
            jax.ShapeDtypeStruct((Bc, _LOSS_LANES), jnp.float32),
        ],
        compiler_params=pltpu.CompilerParams(
            dimension_semantics=("parallel",),          # shards batch grid on v7x 2 TCs
            vmem_limit_bytes=24 * 1024 * 1024),         # conservative for v7x 64 MiB VMEM
        cost_estimate=pl.CostEstimate(flops=flops, transcendentals=0,
                                      bytes_accessed=bytes_accessed),
    )(video.astype(jnp.bfloat16), audio.astype(jnp.bfloat16), enc_all, dec_all)
    return pooled, losses


# --------------------------------------------------------------------------------------
# EMA parameter update kernel (flat persistent storage, in-place via aliasing)
# --------------------------------------------------------------------------------------

def _ema_kernel(alpha_ref, ema_ref, p_ref, o_ref):
    a = alpha_ref[0, 0]                                  # SMEM scalar
    o_ref[...] = a * ema_ref[...] + (1.0 - a) * p_ref[...]


def _ema_update(ema_flat, params_flat, alpha_eff):
    rows, lane = ema_flat.shape
    br = rows if (rows <= 1024 or rows % 1024 != 0) else 1024
    alpha_arr = jnp.asarray(alpha_eff, dtype=jnp.float32).reshape(1, 1)
    return pl.pallas_call(
        _ema_kernel,
        grid=(rows // br,),
        in_specs=[pl.BlockSpec(memory_space=pltpu.MemorySpace.SMEM),
                  pl.BlockSpec((br, lane), lambda i: (i, 0)),
                  pl.BlockSpec((br, lane), lambda i: (i, 0))],
        out_specs=pl.BlockSpec((br, lane), lambda i: (i, 0)),
        out_shape=jax.ShapeDtypeStruct((rows, lane), jnp.float32),
        input_output_aliases={1: 0},                     # ema slab updated in place
        compiler_params=pltpu.CompilerParams(
            dimension_semantics=("parallel",)),
    )(alpha_arr, ema_flat, params_flat)


# --------------------------------------------------------------------------------------
# ESMER math (plain jnp, fused by XLA inside the single jit'd step)
# --------------------------------------------------------------------------------------

def _sample_weight(ema_loss, rm, loss_margin):
    thresh = loss_margin * rm
    use = rm > 0
    sw = jnp.where(use & (ema_loss >= thresh), rm / ema_loss, jnp.ones_like(ema_loss))
    ignore = use & (ema_loss > thresh)
    return sw, ignore


def _running_stats(ema_loss, rm, rstd, alpha, std_margin):
    n = ema_loss.shape[0]
    mean = jnp.mean(ema_loss)
    var = jnp.sum((ema_loss - mean) ** 2) / jnp.maximum(n - 1, 1)
    std = jnp.sqrt(var)                                  # unbiased, like torch .std()
    keep = ema_loss <= mean + std_margin * std
    kf = keep.astype(jnp.float32)
    k = jnp.sum(kf)
    kmean = jnp.sum(ema_loss * kf) / jnp.maximum(k, 1.0)
    kvar = jnp.sum(kf * (ema_loss - kmean) ** 2) / jnp.maximum(k - 1.0, 1.0)
    # TODO(synk): torch .std() would give NaN for <=1 surviving samples; we return 0.
    kstd = jnp.where(k > 1, jnp.sqrt(kvar), 0.0)
    new_rm = alpha * rm + (1.0 - alpha) * kmean
    new_rstd = alpha * rstd + (1.0 - alpha) * kstd
    return new_rm, new_rstd


# --------------------------------------------------------------------------------------
# Single-dispatch training steps
# --------------------------------------------------------------------------------------

@functools.partial(jax.jit,
                   static_argnames=("Bm", "reg_weight", "loss_margin", "std_margin"))
def _train_step_buf(video, audio, buf_video, buf_audio,
                    enc_cur_bd, dec_cur_bd, params_flat, ema_flat,
                    rm, rstd, stat_alpha, ema_alpha_eff,
                    *, Bm, reg_weight, loss_margin, std_margin):
    B, _, Dv = video.shape
    Da = audio.shape[2]
    H = enc_cur_bd.shape[1] // 2
    Bc = B + buf_video.shape[0]

    video_cat = jnp.concatenate([video, buf_video], axis=0)
    audio_cat = jnp.concatenate([audio, buf_audio], axis=0)

    enc_all, dec_all = _build_weight_blocks(enc_cur_bd, dec_cur_bd, ema_flat,
                                            Dv, Da, H, n_sets=2)
    pooled, losses = _fused_backbone(video_cat, audio_cat, enc_all, dec_all, n_sets=2)

    pv_cur, pa_cur = pooled[:, 0:H], pooled[:, H:2 * H]
    pv_ema, pa_ema = pooled[:, 2 * H:3 * H], pooled[:, 3 * H:4 * H]
    lv_cur, la_cur = losses[:, 0], losses[:, 1]
    lv_ema, la_ema = losses[:, 2], losses[:, 3]

    # EMA-model loss on the current batch (sum over loss keys, per-sample).
    ema_model_loss = lv_ema[:B] + la_ema[:B]
    sw, ignore_mask = _sample_weight(ema_model_loss, rm, loss_margin)

    # Weighted mean over the (current + replay) batch, replay weight 1 (as in reference).
    w_full = jnp.concatenate([sw, jnp.ones((Bc - B,), jnp.float32)], axis=0)
    loss_v = jnp.mean(lv_cur * w_full)
    loss_a = jnp.mean(la_cur * w_full)

    # Consistency penalty vs. detached EMA pooled latents of the replay samples.
    dv = pv_cur[-Bm:] - jax.lax.stop_gradient(pv_ema[-Bm:])
    da = pa_cur[-Bm:] - jax.lax.stop_gradient(pa_ema[-Bm:])
    penalty = reg_weight * jnp.mean(da * da) + reg_weight * jnp.mean(dv * dv)

    new_rm, new_rstd = _running_stats(ema_model_loss, rm, rstd, stat_alpha, std_margin)
    new_ema_flat = _ema_update(ema_flat, params_flat, ema_alpha_eff)

    return (pv_cur, pa_cur, loss_v, loss_a, penalty,
            ignore_mask, new_rm, new_rstd, new_ema_flat)


@functools.partial(jax.jit, static_argnames=("loss_margin", "std_margin"))
def _train_step_nobuf(video, audio, enc_cur_bd, dec_cur_bd, params_flat, ema_flat,
                      rm, rstd, stat_alpha, ema_alpha_eff,
                      *, loss_margin, std_margin):
    _, _, Dv = video.shape
    Da = audio.shape[2]
    H = enc_cur_bd.shape[1] // 2

    enc_all, dec_all = _build_weight_blocks(enc_cur_bd, dec_cur_bd, ema_flat,
                                            Dv, Da, H, n_sets=2)
    pooled, losses = _fused_backbone(video, audio, enc_all, dec_all, n_sets=2)

    pv_cur, pa_cur = pooled[:, 0:H], pooled[:, H:2 * H]
    lv_cur, la_cur = losses[:, 0], losses[:, 1]
    lv_ema, la_ema = losses[:, 2], losses[:, 3]

    ema_model_loss = lv_ema + la_ema
    _, ignore_mask = _sample_weight(ema_model_loss, rm, loss_margin)

    loss_v = jnp.mean(lv_cur)        # plain mean reduction (reference buffer-empty path)
    loss_a = jnp.mean(la_cur)

    new_rm, new_rstd = _running_stats(ema_model_loss, rm, rstd, stat_alpha, std_margin)
    new_ema_flat = _ema_update(ema_flat, params_flat, ema_alpha_eff)

    return (pv_cur, pa_cur, loss_v, loss_a,
            ignore_mask, new_rm, new_rstd, new_ema_flat)


@jax.jit
def _eval_step(video, audio, enc_cur_bd, dec_cur_bd):
    H = enc_cur_bd.shape[1] // 2
    pooled, losses = _fused_backbone(video, audio, enc_cur_bd, dec_cur_bd, n_sets=1)
    return (pooled[:, :H], pooled[:, H:2 * H],
            jnp.mean(losses[:, 0]), jnp.mean(losses[:, 1]))


# --------------------------------------------------------------------------------------
# Host-side state / glue
# --------------------------------------------------------------------------------------

class SimpleBuffer:
    """Minimal task-free FIFO replay buffer (host side, numpy).

    # TODO(synk): the original Buffer_task_free (reservoir / task-free sampling policy)
    # is host-side state with data-dependent shapes; no Pallas equivalent.
    """

    def __init__(self, capacity=64):
        self.capacity = capacity
        self.video = None
        self.audio = None

    def is_empty(self):
        return self.video is None or len(self.video) == 0

    def add_data(self, video, audio):
        if len(video) == 0:
            return
        if self.video is None:
            self.video, self.audio = video.copy(), audio.copy()
        else:
            self.video = np.concatenate([self.video, video], axis=0)[-self.capacity:]
            self.audio = np.concatenate([self.audio, audio], axis=0)[-self.capacity:]

    def get_data(self, n):
        m = len(self.video)
        idx = np.arange(n) % m
        return {"video_data": jnp.asarray(self.video[idx]),
                "audio_data": jnp.asarray(self.audio[idx])}


class ESMERPallas:
    def __init__(self, batch_size, reg_weight, ema_model_update_freq, ema_model_alpha,
                 loss_margin, loss_alpha, std_margin, T, Dv, Da, H, key):
        self.batch_size = batch_size
        self.reg_weight = float(reg_weight)
        self.ema_model_update_freq = ema_model_update_freq
        self.ema_model_alpha = ema_model_alpha
        self.loss_margin = float(loss_margin)
        self.loss_alpha = loss_alpha
        self.std_margin = float(std_margin)
        self.global_step = 0
        # running loss stats live ON DEVICE (no per-step host sync for them)
        self.loss_running_mean = jnp.zeros((), jnp.float32)
        self.loss_running_std = jnp.zeros((), jnp.float32)
        self.buffer = SimpleBuffer()
        self.training = True
        self.Dv, self.Da, self.H, self.T = Dv, Da, H, T

        k1, k2, k3, k4 = jax.random.split(key, 4)
        s = 0.1
        self.params = {
            "wv_enc": s * jax.random.normal(k1, (Dv, H), jnp.float32),
            "wv_dec": s * jax.random.normal(k2, (H, Dv), jnp.float32),
            "wa_enc": s * jax.random.normal(k3, (Da, H), jnp.float32),
            "wa_dec": s * jax.random.normal(k4, (H, Da), jnp.float32),
        }
        # persistent bf16 block-diagonal weights of the (fixed) current model
        # TODO(synk): if the backbone were trained, refresh these after optimizer steps.
        self.enc_cur_bd = _block_diag2(self.params["wv_enc"],
                                       self.params["wa_enc"]).astype(jnp.bfloat16)
        self.dec_cur_bd = _block_diag2(self.params["wv_dec"],
                                       self.params["wa_dec"]).astype(jnp.bfloat16)
        # persistent flat f32 storage for the one-shot EMA update (no per-step concat)
        self.params_flat = _flatten_params(self.params)
        self.ema_flat = jnp.array(self.params_flat)      # deepcopy of the backbone

    # ----- ESMER forward -----
    def forward(self, inputs):
        video = jnp.asarray(inputs["video_data"])
        audio = jnp.asarray(inputs["audio_data"])

        if not self.training:
            pv, pa, lv, la = _eval_step(video, audio, self.enc_cur_bd, self.dec_cur_bd)
            return {"video_output": pv, "audio_output": pa, "loss_v": lv, "loss_a": la}

        # kick off async D2H of the current batch (needed later for the buffer add)
        for arr in (video, audio):
            try:
                arr.copy_to_host_async()
            except Exception:
                pass

        buffer_empty = self.buffer.is_empty()

        # host-side bookkeeping that does NOT depend on device results
        self.global_step += 1
        gs = self.global_step
        # TODO(synk): torch.rand(1) gate replaced with a deterministic seeded draw.
        do_ema = np.random.RandomState(gs).rand() < self.ema_model_update_freq
        ema_alpha_eff = (min(1.0 - 1.0 / (gs + 1), self.ema_model_alpha)
                         if do_ema else 1.0)
        stat_alpha = min(1.0 - 1.0 / (gs + 1), self.loss_alpha)

        if not buffer_empty:
            # TODO(synk): modality_token / masked_visual / masked_audio flags of the real
            # multimodal backbone have no equivalent in this synthetic auto-encoder.
            buf = self.buffer.get_data(self.batch_size)
            (pv, pa, loss_v, loss_a, penalty,
             ignore_mask, new_rm, new_rstd, new_ema) = _train_step_buf(
                video, audio, buf["video_data"], buf["audio_data"],
                self.enc_cur_bd, self.dec_cur_bd, self.params_flat, self.ema_flat,
                self.loss_running_mean, self.loss_running_std,
                stat_alpha, ema_alpha_eff,
                Bm=self.batch_size, reg_weight=self.reg_weight,
                loss_margin=self.loss_margin, std_margin=self.std_margin)
            output = {"video_output": pv, "audio_output": pa,
                      "loss_v": loss_v, "loss_a": loss_a, "penalty_loss": penalty}
        else:
            (pv, pa, loss_v, loss_a,
             ignore_mask, new_rm, new_rstd, new_ema) = _train_step_nobuf(
                video, audio, self.enc_cur_bd, self.dec_cur_bd,
                self.params_flat, self.ema_flat,
                self.loss_running_mean, self.loss_running_std,
                stat_alpha, ema_alpha_eff,
                loss_margin=self.loss_margin, std_margin=self.std_margin)
            output = {"video_output": pv, "audio_output": pa,
                      "loss_v": loss_v, "loss_a": loss_a,
                      # matches the reference's torch.Tensor([0]) shape in this branch
                      "penalty_loss": jnp.zeros((1,), jnp.float32)}

        # persist device-side state (no host sync)
        self.loss_running_mean, self.loss_running_std = new_rm, new_rstd
        self.ema_flat = new_ema

        # the ONLY per-step host sync: replay-buffer add (data-dependent shape)
        keep = ~np.asarray(jax.device_get(ignore_mask))
        v_host = np.asarray(video)[: self.batch_size]
        a_host = np.asarray(audio)[: self.batch_size]
        self.buffer.add_data(v_host[keep], a_host[keep])
        return output


# --------------------------------------------------------------------------------------

if __name__ == "__main__":
    key = jax.random.PRNGKey(0)
    B, T, Dv, Da, H = 2, 8, 32, 32, 32
    kv, ka, kp = jax.random.split(key, 3)
    video = jax.random.normal(kv, (B, T, Dv), jnp.float32)
    audio = jax.random.normal(ka, (B, T, Da), jnp.float32)

    model = ESMERPallas(
        batch_size=B, reg_weight=0.1, ema_model_update_freq=1.0,
        ema_model_alpha=0.999, loss_margin=1.5, loss_alpha=0.99, std_margin=1.0,
        T=T, Dv=Dv, Da=Da, H=H, key=kp,
    )
    model.training = True

    inputs = {"video_data": video, "audio_data": audio}
    out1 = model.forward(dict(inputs))   # buffer-empty path (penalty_loss = 0)
    out2 = model.forward(dict(inputs))   # buffer non-empty path (full ESMER path)

    for v in list(out1.values()) + list(out2.values()):
        jax.block_until_ready(v)
    jax.block_until_ready(model.loss_running_mean)
    jax.block_until_ready(model.ema_flat)

    print("KERNEL_OK")
</pallas_src>

<mosaic_0001>
module attributes {stable_mosaic.version = 11 : i64} {
  func.func @_fused_backbone_kernel(%arg0: i32, %arg1: memref<2x8x32xbf16, #tpu.memory_space<vmem>>, %arg2: memref<2x8x32xbf16, #tpu.memory_space<vmem>>, %arg3: memref<64x128xbf16, #tpu.memory_space<vmem>>, %arg4: memref<128x128xbf16, #tpu.memory_space<vmem>>, %arg5: memref<2x128xf32, #tpu.memory_space<vmem>>, %arg6: memref<2x128xf32, #tpu.memory_space<vmem>>) attributes {dimension_semantics = [#tpu.dimension_semantics<parallel>], iteration_bounds = array<i64: 1>, scalar_prefetch = 0 : i64, scratch_operands = 0 : i64, tpu.core_type = #tpu.core_type<tc>, window_params = [{transform_indices = @transform_0, window_bounds = array<i64: 2, 8, 32>}, {transform_indices = @transform_1, window_bounds = array<i64: 2, 8, 32>}, {pipeline_mode = #tpu.pipeline_mode<synchronous>, transform_indices = @transform_2, window_bounds = array<i64: 64, 128>}, {pipeline_mode = #tpu.pipeline_mode<synchronous>, transform_indices = @transform_3, window_bounds = array<i64: 128, 128>}, {transform_indices = @transform_4, window_bounds = array<i64: 2, 128>}, {transform_indices = @transform_5, window_bounds = array<i64: 2, 128>}]} {
    %c0 = arith.constant 0 : index
    %c0_0 = arith.constant 0 : index
    %c0_1 = arith.constant 0 : index
    %0 = vector.load %arg1[%c0, %c0_0, %c0_1] : memref<2x8x32xbf16, #tpu.memory_space<vmem>>, vector<2x8x32xbf16>
    %1 = vector.shape_cast %0 : vector<2x8x32xbf16> to vector<16x32xbf16>
    %c0_2 = arith.constant 0 : index
    %c0_3 = arith.constant 0 : index
    %c0_4 = arith.constant 0 : index
    %2 = vector.load %arg2[%c0_2, %c0_3, %c0_4] : memref<2x8x32xbf16, #tpu.memory_space<vmem>>, vector<2x8x32xbf16>
    %3 = vector.shape_cast %2 : vector<2x8x32xbf16> to vector<16x32xbf16>
    %4 = tpu.concatenate %1, %3 in 1 : vector<16x32xbf16>, vector<16x32xbf16> -> vector<16x64xbf16>
    %c0_5 = arith.constant 0 : index
    %c0_6 = arith.constant 0 : index
    %5 = vector.load %arg3[%c0_5, %c0_6] : memref<64x128xbf16, #tpu.memory_space<vmem>>, vector<64x128xbf16>
    %cst = arith.constant dense<0.000000e+00> : vector<16x128xf32>
    %6 = tpu.matmul %4, %5, %cst {dimension_numbers = #tpu.dot_dimension_numbers<[1], [0], [0], [1], [0, 0, 1, 1], [], []>} : vector<16x64xbf16>, vector<64x128xbf16>, vector<16x128xf32> -> vector<16x128xf32>
    %7 = vector.shape_cast %6 : vector<16x128xf32> to vector<2x8x128xf32>
    %cst_7 = arith.constant dense<0.000000e+00> : vector<2x128xf32>
    %8 = vector.multi_reduction <add>, %7, %cst_7 [1] : vector<2x8x128xf32> to vector<2x128xf32>
    %cst_8 = arith.constant 8.000000e+00 : f32
    %9 = vector.broadcast %cst_8 : f32 to vector<2x128xf32>
    %10 = arith.divf %8, %9 : vector<2x128xf32>
    %c0_9 = arith.constant 0 : index
    %c0_10 = arith.constant 0 : index
    %11 = vector.load %arg5[%c0_9, %c0_10] : memref<2x128xf32, #tpu.memory_space<vmem>>, vector<2x128xf32>
    tpu.vector_store %arg5[%c0_9, %c0_10], %10 {strides = array<i32>} : memref<2x128xf32, #tpu.memory_space<vmem>>, vector<2x128xf32>,
    %12 = arith.truncf %6 : vector<16x128xf32> to vector<16x128xbf16>
    %c0_11 = arith.constant 0 : index
    %c0_12 = arith.constant 0 : index
    %13 = vector.load %arg4[%c0_11, %c0_12] : memref<128x128xbf16, #tpu.memory_space<vmem>>, vector<128x128xbf16>
    %cst_13 = arith.constant dense<0.000000e+00> : vector<16x128xf32>
    %14 = tpu.matmul %12, %13, %cst_13 {dimension_numbers = #tpu.dot_dimension_numbers<[1], [0], [0], [1], [0, 0, 1, 1], [], []>} : vector<16x128xbf16>, vector<128x128xbf16>, vector<16x128xf32> -> vector<16x128xf32>
    %15 = tpu.concatenate %4, %4 in 1 : vector<16x64xbf16>, vector<16x64xbf16> -> vector<16x128xbf16>
    %16 = arith.extf %15 : vector<16x128xbf16> to vector<16x128xf32>
    %17 = arith.subf %14, %16 : vector<16x128xf32>
    %18 = arith.mulf %17, %17 : vector<16x128xf32>
    %19 = vector.shape_cast %18 : vector<16x128xf32> to vector<2x8x128xf32>
    %cst_14 = arith.constant dense<0.000000e+00> : vector<2x128xf32>
    %20 = vector.multi_reduction <add>, %19, %cst_14 [1] : vector<2x8x128xf32> to vector<2x128xf32>
    %cst_15 = arith.constant 8.000000e+00 : f32
    %21 = vector.broadcast %cst_15 : f32 to vector<2x128xf32>
    %22 = arith.divf %20, %21 : vector<2x128xf32>
    %cst_16 = arith.constant 0.000000e+00 : f32
    %23 = vector.broadcast %cst_16 : f32 to vector<2x128xf32>
    %c0_17 = arith.constant 0 : index
    %c0_18 = arith.constant 0 : index
    %24 = vector.load %arg6[%c0_17, %c0_18] : memref<2x128xf32, #tpu.memory_space<vmem>>, vector<2x128xf32>
    tpu.vector_store %arg6[%c0_17, %c0_18], %23 {strides = array<i32>} : memref<2x128xf32, #tpu.memory_space<vmem>>, vector<2x128xf32>,
    %25 = vector.extract_strided_slice %22 {offsets = [0, 0], sizes = [2, 32], strides = [1, 1]} : vector<2x128xf32> to vector<2x32xf32>
    %cst_19 = arith.constant dense<0.000000e+00> : vector<2xf32>
    %26 = vector.multi_reduction <add>, %25, %cst_19 [1] : vector<2x32xf32> to vector<2xf32>
    %27 = vector.shape_cast %26 : vector<2xf32> to vector<2x1xf32>
    %cst_20 = arith.constant 3.200000e+01 : f32
    %28 = vector.broadcast %cst_20 : f32 to vector<2x1xf32>
    %29 = arith.divf %27, %28 : vector<2x1xf32>
    %c0_21 = arith.constant 0 : index
    %c0_22 = arith.constant 0 : index
    %30 = vector.load %arg6[%c0_21, %c0_22] : memref<2x128xf32, #tpu.memory_space<vmem>>, vector<2x1xf32>
    tpu.vector_store %arg6[%c0_21, %c0_22], %29 {strides = array<i32>} : memref<2x128xf32, #tpu.memory_space<vmem>>, vector<2x1xf32>,
    %31 = vector.extract_strided_slice %22 {offsets = [0, 32], sizes = [2, 32], strides = [1, 1]} : vector<2x128xf32> to vector<2x32xf32>
    %cst_23 = arith.constant dense<0.000000e+00> : vector<2xf32>
    %32 = vector.multi_reduction <add>, %31, %cst_23 [1] : vector<2x32xf32> to vector<2xf32>
    %33 = vector.shape_cast %32 : vector<2xf32> to vector<2x1xf32>
    %cst_24 = arith.constant 3.200000e+01 : f32
    %34 = vector.broadcast %cst_24 : f32 to vector<2x1xf32>
    %35 = arith.divf %33, %34 : vector<2x1xf32>
    %c0_25 = arith.constant 0 : index
    %c1 = arith.constant 1 : index
    %36 = vector.load %arg6[%c0_25, %c1] : memref<2x128xf32, #tpu.memory_space<vmem>>, vector<2x1xf32>
    tpu.vector_store %arg6[%c0_25, %c1], %35 {strides = array<i32>} : memref<2x128xf32, #tpu.memory_space<vmem>>, vector<2x1xf32>,
    %37 = vector.extract_strided_slice %22 {offsets = [0, 64], sizes = [2, 32], strides = [1, 1]} : vector<2x128xf32> to vector<2x32xf32>
    %cst_26 = arith.constant dense<0.000000e+00> : vector<2xf32>
    %38 = vector.multi_reduction <add>, %37, %cst_26 [1] : vector<2x32xf32> to vector<2xf32>
    %39 = vector.shape_cast %38 : vector<2xf32> to vector<2x1xf32>
    %cst_27 = arith.constant 3.200000e+01 : f32
    %40 = vector.broadcast %cst_27 : f32 to vector<2x1xf32>
    %41 = arith.divf %39, %40 : vector<2x1xf32>
    %c0_28 = arith.constant 0 : index
    %c2 = arith.constant 2 : index
    %42 = vector.load %arg6[%c0_28, %c2] : memref<2x128xf32, #tpu.memory_space<vmem>>, vector<2x1xf32>
    tpu.vector_store %arg6[%c0_28, %c2], %41 {strides = array<i32>} : memref<2x128xf32, #tpu.memory_space<vmem>>, vector<2x1xf32>,
    %43 = vector.extract_strided_slice %22 {offsets = [0, 96], sizes = [2, 32], strides = [1, 1]} : vector<2x128xf32> to vector<2x32xf32>
    %cst_29 = arith.constant dense<0.000000e+00> : vector<2xf32>
    %44 = vector.multi_reduction <add>, %43, %cst_29 [1] : vector<2x32xf32> to vector<2xf32>
    %45 = vector.shape_cast %44 : vector<2xf32> to vector<2x1xf32>
    %cst_30 = arith.constant 3.200000e+01 : f32
    %46 = vector.broadcast %cst_30 : f32 to vector<2x1xf32>
    %47 = arith.divf %45, %46 : vector<2x1xf32>
    %c0_31 = arith.constant 0 : index
    %c3 = arith.constant 3 : index
    %48 = vector.load %arg6[%c0_31, %c3] : memref<2x128xf32, #tpu.memory_space<vmem>>, vector<2x1xf32>
    tpu.vector_store %arg6[%c0_31, %c3], %47 {strides = array<i32>} : memref<2x128xf32, #tpu.memory_space<vmem>>, vector<2x1xf32>,
    return
  }
  func.func @transform_0(%arg0: i32) -> (i32, i32, i32) {
    %c0_i32 = arith.constant 0 : i32
    %c0_i32_0 = arith.constant 0 : i32
    %c0_i32_1 = arith.constant 0 : i32
    return %arg0, %c0_i32, %c0_i32_0 : i32, i32, i32
  }
  func.func @transform_1(%arg0: i32) -> (i32, i32, i32) {
    %c0_i32 = arith.constant 0 : i32
    %c0_i32_0 = arith.constant 0 : i32
    %c0_i32_1 = arith.constant 0 : i32
    return %arg0, %c0_i32, %c0_i32_0 : i32, i32, i32
  }
  func.func @transform_2(%arg0: i32) -> (i32, i32) {
    %c0_i32 = arith.constant 0 : i32
    %c0_i32_0 = arith.constant 0 : i32
    %c0_i32_1 = arith.constant 0 : i32
    return %c0_i32, %c0_i32_0 : i32, i32
  }
  func.func @transform_3(%arg0: i32) -> (i32, i32) {
    %c0_i32 = arith.constant 0 : i32
    %c0_i32_0 = arith.constant 0 : i32
    %c0_i32_1 = arith.constant 0 : i32
    return %c0_i32, %c0_i32_0 : i32, i32
  }
  func.func @transform_4(%arg0: i32) -> (i32, i32) {
    %c0_i32 = arith.constant 0 : i32
    %c0_i32_0 = arith.constant 0 : i32
    return %arg0, %c0_i32 : i32, i32
  }
  func.func @transform_5(%arg0: i32) -> (i32, i32) {
    %c0_i32 = arith.constant 0 : i32
    %c0_i32_0 = arith.constant 0 : i32
    return %arg0, %c0_i32 : i32, i32
  }
}

module attributes {stable_mosaic.version = 11 : i64} {
  func.func @_ema_kernel(%arg0: i32, %arg1: memref<1x1xf32, #tpu.memory_space<smem>>, %arg2: memref<8x512xf32, #tpu.memory_space<vmem>>, %arg3: memref<8x512xf32, #tpu.memory_space<vmem>>, %arg4: memref<8x512xf32, #tpu.memory_space<vmem>>) attributes {dimension_semantics = [#tpu.dimension_semantics<parallel>], iteration_bounds = array<i64: 1>, scalar_prefetch = 0 : i64, scratch_operands = 0 : i64, tpu.core_type = #tpu.core_type<tc>, window_params = [{transform_indices = @transform_0, window_bounds = array<i64: 1, 1>}, {transform_indices = @transform_1, window_bounds = array<i64: 8, 512>}, {transform_indices = @transform_2, window_bounds = array<i64: 8, 512>}, {transform_indices = @transform_3, window_bounds = array<i64: 8, 512>}]} {
    %c0 = arith.constant 0 : index
    %c0_0 = arith.constant 0 : index
    %0 = memref.load %arg1[%c0, %c0_0] : memref<1x1xf32, #tpu.memory_space<smem>>
    %c0_1 = arith.constant 0 : index
    %c0_2 = arith.constant 0 : index
    %1 = vector.load %arg2[%c0_1, %c0_2] : memref<8x512xf32, #tpu.memory_space<vmem>>, vector<8x512xf32>
    %2 = vector.broadcast %0 : f32 to vector<8x512xf32>
    %3 = arith.mulf %2, %1 : vector<8x512xf32>
    %cst = arith.constant 1.000000e+00 : f32
    %4 = arith.subf %cst, %0 : f32
    %c0_3 = arith.constant 0 : index
    %c0_4 = arith.constant 0 : index
    %5 = vector.load %arg3[%c0_3, %c0_4] : memref<8x512xf32, #tpu.memory_space<vmem>>, vector<8x512xf32>
    %6 = vector.broadcast %4 : f32 to vector<8x512xf32>
    %7 = arith.mulf %6, %5 : vector<8x512xf32>
    %8 = arith.addf %3, %7 : vector<8x512xf32>
    %c0_5 = arith.constant 0 : index
    %c0_6 = arith.constant 0 : index
    %9 = vector.load %arg4[%c0_5, %c0_6] : memref<8x512xf32, #tpu.memory_space<vmem>>, vector<8x512xf32>
    tpu.vector_store %arg4[%c0_5, %c0_6], %8 {strides = array<i32>} : memref<8x512xf32, #tpu.memory_space<vmem>>, vector<8x512xf32>,
    return
  }
  func.func @transform_0(%arg0: i32) -> (i32, i32) {
    %c0_i32 = arith.constant 0 : i32
    %c0_i32_0 = arith.constant 0 : i32
    %c0_i32_1 = arith.constant 0 : i32
    return %c0_i32, %c0_i32_0 : i32, i32
  }
  func.func @transform_1(%arg0: i32) -> (i32, i32) {
    %c0_i32 = arith.constant 0 : i32
    %c0_i32_0 = arith.constant 0 : i32
    return %arg0, %c0_i32 : i32, i32
  }
  func.func @transform_2(%arg0: i32) -> (i32, i32) {
    %c0_i32 = arith.constant 0 : i32
    %c0_i32_0 = arith.constant 0 : i32
    return %arg0, %c0_i32 : i32, i32
  }
  func.func @transform_3(%arg0: i32) -> (i32, i32) {
    %c0_i32 = arith.constant 0 : i32
    %c0_i32_0 = arith.constant 0 : i32
    return %arg0, %c0_i32 : i32, i32
  }
}

</mosaic_0001>

<bundles_post_ra>
// kernel: _train_step_nobuf.3
= control target key start
LH: loop header
LB: loop body
LE: loop exit
PB: predicated region body
PF: predicated region fallthrough
CT: control target
= control target key end

     0   :  { %s109_s0 = inlined_call_operand.<no memory space> [shape: f32[1,1], index: 0, kind: input, shape index: {}]   ;;  %s110_s1 = inlined_call_operand.vmem [shape: f32[8,512], index: 1, kind: input, shape index: {}, may-alias: {1,3}]   ;;  %s111_s2 = inlined_call_operand.vmem [shape: f32[8,512], index: 2, kind: input, shape index: {}]   ;;  %s112_s3 = inlined_call_operand.vmem [shape: f32[8,512], index: 3, kind: output, shape index: {}, may-alias: {1,3}]  }
   0x1   :  { %v16_v0 = vld [vmem:[%s110_s1] sm:$0xff]  ;;  %v20_v1 = vstv %s109_s0  ;;  %s25_s18 = ssub.f32 1.0, %s109_s0  ;;  %v17_v3 = vld [vmem:[%s110_s1 + $0x8] sm:$0xff]  ;;  %v18_v7 = vld [vmem:[%s110_s1 + $0x10] sm:$0xff] }
   0x2   :  { %v26_v2 = vld [vmem:[%s111_s2] sm:$0xff]  ;;  %v21_v4 = vmul.f32 %v20_v1, %v16_v0  ;;  %v22_v5 = vmul.f32 %v20_v1, %v17_v3  ;;  %v27_v6 = vld [vmem:[%s111_s2 + $0x8] sm:$0xff]  ;;  %v28_v8 = vld [vmem:[%s111_s2 + $0x10] sm:$0xff]  ;;  %v23_v10 = vmul.f32 %v20_v1, %v18_v7 }
   0x3   :  { %v30_v9 = vstv %s25_s18  ;;  %v19_v11 = vld [vmem:[%s110_s1 + $0x18] sm:$0xff] }
   0x4   :  { %v29_v12 = vld [vmem:[%s111_s2 + $0x18] sm:$0xff]  ;;  %v31_v13 = vmul.f32 %v30_v9, %v26_v2  ;;  %v32_v14 = vmul.f32 %v30_v9, %v27_v6  ;;  %v33_v15 = vmul.f32 %v30_v9, %v28_v8  ;;  %v24_v16 = vmul.f32 %v20_v1, %v19_v11 }
   0x5   :  { %v34_v17 = vmul.f32 %v30_v9, %v29_v12 }
   0x6   :  { %v35_v18 = vadd.f32 %v31_v13, %v21_v4  ;;  %v36_v19 = vadd.f32 %v32_v14, %v22_v5  ;;  %v37_v20 = vadd.f32 %v33_v15, %v23_v10 }
   0x7   :  { %v38_v21 = vadd.f32 %v34_v17, %v24_v16 }
   0x8   :  { %39 = vst [vmem:[%s112_s3] sm:$0xff] %v35_v18  ;;  %40 = vst [vmem:[%s112_s3 + $0x8] sm:$0xff] %v36_v19 }
   0x9   :  { %41 = vst [vmem:[%s112_s3 + $0x10] sm:$0xff] %v37_v20  ;;  %42 = vst [vmem:[%s112_s3 + $0x18] sm:$0xff] %v38_v21 }

// kernel: _train_step_nobuf.2
= control target key start
LH: loop header
LB: loop body
LE: loop exit
PB: predicated region body
PF: predicated region fallthrough
CT: control target
= control target key end

     0   :  { %v397_v1 = vmov 0.0   ;;  %vm398_vm0 = vmmov 0   ;;  %s399_s22 = smov 32   ;;  %vm36_vm1 = vcmask 261120   ;;  %vm72_vm2 = vcmask 523264   ;;  %s400_s12 = smov 64   ;;  %s515_s1 = inlined_call_operand.vmem [shape: bf16[2,8,32], index: 1, kind: input, shape index: {}]   ;;  %s516_s2 = inlined_call_operand.vmem [shape: bf16[64,128], index: 2, kind: input, shape index: {}]   ;;  %s517_s0 = inlined_call_operand.vmem [shape: bf16[2,8,32], index: 0, kind: input, shape index: {}]   ;;  %s518_s3 = inlined_call_operand.vmem [shape: bf16[128,128], index: 3, kind: input, shape index: {}]   ;;  %s519_s4 = inlined_call_operand.vmem [shape: f32[2,128], index: 4, kind: output, shape index: {0}]   ;;  %s520_s5 = inlined_call_operand.vmem [shape: f32[2,128], index: 5, kind: output, shape index: {1}]  }
   0x1   :  { %v383_v0 = vld [vmem:[%s515_s1] sm:$0xff]   ;;  %346 = vmatprep.subr.bf16.mxu0 %v397_v1  ;;  %354 = vmatprep.mubr.msk.bf16.mxu0 %vm398_vm0, %v397_v1  ;;  %v384_v2 = vld [vmem:[%s516_s2 + $0x18] sm:$0xff]   ;;  %v385_v3 = vld [vmem:[%s516_s2 + $0x10] sm:$0xff]   ;;  %vm133_vm3 = vcmask 1041409   ;;  %269 = vst [vmem:[%s520_s5] sm:$0x3] %v397_v1  ;;  %s401_s23 = smov 96  }
   0x2   :  { %358 = vmatprep.subr.bf16.mxu1 %v397_v1  ;;  %374 = vmatprep.mubr.msk.bf16.mxu1 %vm398_vm0, %v397_v1  ;;  %v386_v4 = vld [vmem:[%s516_s2 + $0x8] sm:$0xff]   ;;  %v387_v5 = vld [vmem:[%s516_s2] sm:$0xff]   ;;  %v389_v6 = vld [vmem:[%s518_s3 + $0x38] sm:$0xff]   ;;  %vm274_vm4 = vcmask 254976   ;;  %vm280_vm5 = vcmask 1024   ;;  %vm289_vm6 = vcmask 9224  }
   0x3   :  { %34 = vrot.lane.b32.xlu0 %v383_v0, %s399_s22  ;;  %347 = vmatpush3.bf16.msra.mxu0 %v384_v2  ;;  %v390_v7 = vld [vmem:[%s518_s3 + $0x30] sm:$0xff]   ;;  %v391_v8 = vld [vmem:[%s518_s3 + $0x28] sm:$0xff]   ;;  %v388_v9 = vld [vmem:[%s517_s0] sm:$0xff]   ;;  %vm298_vm7 = vcmask 17424   ;;  %vm307_vm8 = vcmask 25624  }
   0x4   :  { %348 = vmatprep.subr.bf16.mxu0 %v397_v1  ;;  %359 = vmatpush3.bf16.msra.mxu1 %v389_v6  ;;  %v392_v11 = vld [vmem:[%s518_s3 + $0x20] sm:$0xff]   ;;  %v393_v13 = vld [vmem:[%s518_s3 + $0x18] sm:$0xff]   ;;  %v394_v14 = vld [vmem:[%s518_s3 + $0x10] sm:$0xff]  }
   0x5   :  { %360 = vmatprep.subr.bf16.mxu1 %v397_v1  ;;  %v395_v15 = vld [vmem:[%s518_s3 + $0x8] sm:$0xff]   ;;  %v396_v16 = vld [vmem:[%s518_s3] sm:$0xff]  }
   0x7   :  { %349 = vmatpush3.bf16.msra.mxu0 %v385_v3 }
   0x8   :  { %350 = vmatprep.subr.bf16.mxu0 %v397_v1  ;;  %361 = vmatpush3.bf16.msra.mxu1 %v390_v7 }
   0x9   :  { %362 = vmatprep.subr.bf16.mxu1 %v397_v1 }
   0xb   :  { %351 = vmatpush3.bf16.msra.mxu0 %v386_v4 }
   0xc   :  { %352 = vmatprep.subr.bf16.mxu0 %v397_v1  ;;  %363 = vmatpush3.bf16.msra.mxu1 %v391_v8 }
   0xd   :  { %364 = vmatprep.subr.bf16.mxu1 %v397_v1 }
   0xf   :  { %353 = vmatpush3.bf16.msra.mxu0 %v387_v5 }
  0x10   :  { %365 = vmatpush3.bf16.msra.mxu1 %v392_v11 }
  0x11   :  { %366 = vmatprep.subr.bf16.mxu1 %v397_v1 }
  0x14   :  { %367 = vmatpush3.bf16.msra.mxu1 %v393_v13 }
  0x15   :  { %368 = vmatprep.subr.bf16.mxu1 %v397_v1 }
  0x18   :  { %369 = vmatpush3.bf16.msra.mxu1 %v394_v14 }
  0x19   :  { %370 = vmatprep.subr.bf16.mxu1 %v397_v1 }
  0x1c   :  { %371 = vmatpush3.bf16.msra.mxu1 %v395_v15 }
  0x1d   :  { %372 = vmatprep.subr.bf16.mxu1 %v397_v1 }
  0x20   :  { %373 = vmatpush3.bf16.msra.mxu1 %v396_v16 }
  0x75   :  { %v35_v10 = vpop.permute.xlu0 %34 }
  0x76   :  { %v39_v12 = vsel %vm36_vm1, %v388_v9, %v35_v10 }
  0x77   :  { %244 = vrot.lane.b32.xlu0 %v39_v12, %s400_s12  ;;  %355 = vmatmul.mubr.msk.bf16.vlgmr.msra.gmra.mxu0 %vm72_vm2, %v39_v12 }
  0xe9   :  { %v245_v37 = vpop.permute.xlu0 %244 }
  0xea   :  { %v247_v38 = vsel %vm72_vm2, %v39_v12, %v245_v37 }
  0xeb   :  { %v249_v39 = vunpack.c.l.bf16 %v247_v38  ;;  %v250_v44 = vunpack.c.h.bf16 %v247_v38 }
 0x137   :  { %v109_v17 = vpop.f32.mrf.mxu0 }
 0x138   :  { %v116_v18 = vrot.slane %v109_v17, 4 }
 0x139   :  { %v356_v19 = vpop.f32.mrf.mxu0 }
 0x13a   :  { %v117_v20 = vadd.f32 %v116_v18, %v109_v17 }
 0x13b   :  { %v112_v21 = vpop.f32.mrf.mxu0 }
 0x13c   :  { %v118_v22 = vrot.slane %v117_v20, 2  ;;  %v122_v23 = vrot.slane %v112_v21, 4  ;;  %v137_v24 = vpack.c.bf16 %v112_v21, %v109_v17 }
 0x13d   :  { %v357_v25 = vpop.f32.mrf.mxu0 }
 0x13e   :  { %v119_v26 = vadd.f32 %v118_v22, %v117_v20  ;;  %v123_v27 = vadd.f32 %v122_v23, %v112_v21  ;;  %375 = vmatmul.mubr.bf16.vlgmr.msra.gmra.mxu1 %v137_v24 }
 0x140   :  { %v120_v28 = vrot.slane %v119_v26, 1  ;;  %v124_v29 = vrot.slane %v123_v27, 2 }
 0x142   :  { %v125_v30 = vadd.f32 %v124_v29, %v123_v27  ;;  %v121_v31 = vadd.f32 %v120_v28, %v119_v26 }
 0x144   :  { %v126_v32 = vrot.slane %v125_v30, 1  ;;  %v129_v34 = vmul.f32 0.125, %v121_v31 }
 0x146   :  { %v127_v33 = vadd.f32 %v126_v32, %v125_v30 }
 0x148   :  { %v130_v35 = vmul.f32 0.125, %v127_v33 }
 0x14a   :  { %v134_v36 = vsel %vm133_vm3, %v130_v35, %v129_v34 }
 0x14b   :  { %136 = vst [vmem:[%s519_s4] sm:$0x3] %v134_v36 }
 0x1fe   :  { %v236_v40 = vpop.f32.mrf.mxu1 }
 0x1ff   :  { %v251_v41 = vsub.f32 %v236_v40, %v249_v39 }
 0x200   :  { %v376_v42 = vpop.f32.mrf.mxu1 }
 0x201   :  { %v253_v43 = vmul.f32 %v251_v41, %v251_v41 }
 0x202   :  { %v239_v45 = vpop.f32.mrf.mxu1 }
 0x203   :  { %v255_v46 = vrot.slane %v253_v43, 4  ;;  %v252_v47 = vsub.f32 %v239_v45, %v250_v44 }
 0x204   :  { %v377_v48 = vpop.f32.mrf.mxu1 }
 0x205   :  { %v256_v49 = vadd.f32 %v255_v46, %v253_v43  ;;  %v254_v50 = vmul.f32 %v252_v47, %v252_v47 }
 0x207   :  { %v257_v51 = vrot.slane %v256_v49, 2  ;;  %v261_v52 = vrot.slane %v254_v50, 4 }
 0x209   :  { %v258_v53 = vadd.f32 %v257_v51, %v256_v49  ;;  %v262_v54 = vadd.f32 %v261_v52, %v254_v50 }
 0x20b   :  { %v259_v55 = vrot.slane %v258_v53, 1  ;;  %v263_v56 = vrot.slane %v262_v54, 2 }
 0x20d   :  { %v264_v57 = vadd.f32 %v263_v56, %v262_v54  ;;  %v260_v58 = vadd.f32 %v259_v55, %v258_v53 }
 0x20f   :  { %v265_v59 = vrot.slane %v264_v57, 1  ;;  %v267_v61 = vmul.f32 0.125, %v260_v58 }
 0x211   :  { %v266_v60 = vadd.f32 %v265_v59, %v264_v57 }
 0x213   :  { %v268_v62 = vmul.f32 0.125, %v266_v60 }
 0x215   :  { %v272_v63 = vsel %vm133_vm3, %v268_v62, %v267_v61 }
 0x216   :  { %300 = vrot.lane.b32.xlu0 %v272_v63, %s399_s22  ;;  %282 = vrot.lane.b32.xlu1 %v272_v63, %s401_s23  ;;  %v275_v0 = vsel %vm274_vm4, %v272_v63, 0.0 }
 0x21a   :  { %291 = vrot.lane.b32.xlu1 %v272_v63, %s400_s12 }
 0x23e   :  { %276 = vadd.xlane.f32.xlu1 %v275_v0 }
 0x288   :  { %v301_v2 = vpop.permute.xlu0 %300  ;;  %v283_v3 = vpop.permute.xlu1 %282 }
 0x289   :  { %v285_v4 = vsel %vm274_vm4, %v283_v3, 0.0  ;;  %v303_v5 = vsel %vm274_vm4, %v301_v2, 0.0 }
 0x28a   :  { %286 = vadd.xlane.f32.xlu0 %v285_v4  ;;  %304 = vadd.xlane.f32.xlu1 %v303_v5 }
 0x28c   :  { %v292_v1 = vpop.permute.xlu1 %291 }
 0x28d   :  { %v294_v6 = vsel %vm274_vm4, %v292_v1, 0.0 }
 0x28e   :  { %295 = vadd.xlane.f32.xlu0 %v294_v6 }
 0x2c7   :  { %v277_v7 = vpop.xlane.xlu1 %276 }
 0x2c8   :  { %v279_v8 = vmul.f32 0.03125, %v277_v7 }
 0x2ca   :  { %281 = vst.msk [vmem:[%s520_s5] sm:$0x3] %vm280_vm5, %v279_v8 }
 0x313   :  { %v287_v9 = vpop.xlane.xlu0 %286  ;;  %v305_v11 = vpop.xlane.xlu1 %304 }
 0x314   :  { %v288_v10 = vmul.f32 0.03125, %v287_v9  ;;  %v306_v14 = vmul.f32 0.03125, %v305_v11 }
 0x316   :  { %290 = vst.msk [vmem:[%s520_s5] sm:$0x3] %vm289_vm6, %v288_v10 }
 0x317   :  { %v296_v12 = vpop.xlane.xlu0 %295 }
 0x318   :  { %v297_v13 = vmul.f32 0.03125, %v296_v12 }
 0x31a   :  { %299 = vst.msk [vmem:[%s520_s5] sm:$0x3] %vm298_vm7, %v297_v13 }
 0x31b   :  { %308 = vst.msk [vmem:[%s520_s5] sm:$0x3] %vm307_vm8, %v306_v14 }

</bundles_post_ra>
